<compile_context>
chip_gen: v7x
topology: tpu7x:2x2x1
jax: 0.10.0
libtpu: 0.0.40
codegen_flags: <defaults>
</compile_context>

<pallas_src>
import math
import functools

import jax
import jax.numpy as jnp
from jax import lax
from jax.experimental import pallas as pl
from jax.experimental.pallas import tpu as pltpu


def _round_up(x, m):
    return -(-x // m) * m


def _basic_transformer_kernel(x_ref, w_ref, b_ref, o_ref, *,
                              n_true, n_pad, tm, dout_p, scale):
    i = pl.program_id(0)

    x = x_ref[...]              # (n_pad, din_p)   bf16
    w = w_ref[...]              # (din_p, 3*dout_p) bf16
    b = b_ref[...]              # (1, 3*dout_p)    f32

    # One fused, lane-dense QKV projection on the MXU, f32 accumulation.
    qkv = jnp.dot(x, w, preferred_element_type=jnp.float32) + b   # (n_pad, 3*dout_p)

    q_all = qkv[:, :dout_p] * scale          # fold 1/sqrt(d) into Q (N*d, not N*N)
    k = qkv[:, dout_p:2 * dout_p]
    v = qkv[:, 2 * dout_p:]

    # Row tile of Q handled by this grid step (static path when grid == 1).
    if n_pad == tm:
        q = q_all
    else:
        q = lax.dynamic_slice_in_dim(q_all, i * tm, tm, axis=0)   # (tm, dout_p)

    # scores = (Q / sqrt(d)) @ K^T — bf16 MXU operands, f32 accumulation.
    # TODO(synk): if a bundle dump shows vxpose contending with vmatmul at
    # large N, keep K transposed in VMEM instead of contracting dim 1 of K.
    s = lax.dot_general(q.astype(jnp.bfloat16), k.astype(jnp.bfloat16),
                        dimension_numbers=(((1,), (1,)), ((), ())),
                        preferred_element_type=jnp.float32)       # (tm, n_pad)

    if n_pad != n_true:
        # Padded key rows carry only the bias -> exclude them from the softmax.
        col = lax.broadcasted_iota(jnp.int32, (tm, n_pad), 1)
        s = jnp.where(col < n_true, s, -jnp.inf)

    # Numerically stable softmax over keys (dim=1), f32 on VPU/EUP.
    s_max = jnp.max(s, axis=1, keepdims=True)
    p = jnp.exp(s - s_max)
    p = p * pl.reciprocal(jnp.sum(p, axis=1, keepdims=True), approx=True)

    out = jnp.dot(p.astype(jnp.bfloat16), v.astype(jnp.bfloat16),
                  preferred_element_type=jnp.float32)             # (tm, dout_p)
    o_ref[...] = jnp.maximum(out, 0.0).astype(o_ref.dtype)


def basic_transformer(x, wq, bq, wk, bk, wv, bv):
    """
    x  : (N, dim_in)          float32
    w* : (dim_out, dim_in)    (PyTorch nn.Linear layout)
    b* : (dim_out,)
    returns (N, dim_out) float32
    """
    n, din = x.shape
    dout = wq.shape[0]
    scale = 1.0 / math.sqrt(dout)

    din_p = _round_up(din, 128)
    dout_p = _round_up(dout, 128)

    if n >= 128:
        tm = 128
        n_pad = _round_up(n, tm)
    else:
        n_pad = _round_up(max(n, 8), 8)
        tm = n_pad
    grid = (n_pad // tm,)

    def pad2(a, r, c):
        return jnp.pad(a, ((0, r - a.shape[0]), (0, c - a.shape[1])))

    # Fused, pre-transposed, zero-padded weights / biases. Zero-padded columns
    # contribute nothing to QK^T or P@V; padded output columns are sliced off.
    w_qkv = jnp.concatenate(
        [pad2(wq.T, din_p, dout_p),
         pad2(wk.T, din_p, dout_p),
         pad2(wv.T, din_p, dout_p)], axis=1).astype(jnp.bfloat16)   # (din_p, 3*dout_p)
    b_qkv = jnp.concatenate(
        [jnp.pad(bq, (0, dout_p - dout)),
         jnp.pad(bk, (0, dout_p - dout)),
         jnp.pad(bv, (0, dout_p - dout))])[None, :].astype(jnp.float32)
    x_p = pad2(x, n_pad, din_p).astype(jnp.bfloat16)

    kernel = functools.partial(_basic_transformer_kernel,
                               n_true=n, n_pad=n_pad, tm=tm,
                               dout_p=dout_p, scale=scale)

    out = pl.pallas_call(
        kernel,
        out_shape=jax.ShapeDtypeStruct((n_pad, dout_p), jnp.float32),
        grid=grid,
        in_specs=[
            pl.BlockSpec((n_pad, din_p), lambda i: (0, 0)),        # x (full, resident)
            pl.BlockSpec((din_p, 3 * dout_p), lambda i: (0, 0)),   # fused W_qkv
            pl.BlockSpec((1, 3 * dout_p), lambda i: (0, 0)),       # fused bias
        ],
        out_specs=pl.BlockSpec((tm, dout_p), lambda i: (i, 0)),    # lane-dense rows
        compiler_params=pltpu.CompilerParams(
            dimension_semantics=("parallel",)),
    )(x_p, w_qkv, b_qkv)

    return out[:n, :dout]


def _reference(x, wq, bq, wk, bk, wv, bv):
    q = x @ wq.T + bq
    k = x @ wk.T + bk
    v = x @ wv.T + bv
    s = (q @ k.T) / math.sqrt(wq.shape[0])
    p = jax.nn.softmax(s, axis=1)
    return jnp.maximum(p @ v, 0.0)


if __name__ == "__main__":
    N, DIM_IN, DIM_OUT = 8, 32, 32

    key = jax.random.PRNGKey(0)
    kx, kq, kk, kv, kbq, kbk, kbv = jax.random.split(key, 7)

    x = jax.random.normal(kx, (N, DIM_IN), dtype=jnp.float32)

    # deterministic parameter init (mimics nn.Linear uniform(-1/sqrt(in), 1/sqrt(in)))
    bound = 1.0 / math.sqrt(DIM_IN)
    wq = jax.random.uniform(kq, (DIM_OUT, DIM_IN), minval=-bound, maxval=bound)
    wk = jax.random.uniform(kk, (DIM_OUT, DIM_IN), minval=-bound, maxval=bound)
    wv = jax.random.uniform(kv, (DIM_OUT, DIM_IN), minval=-bound, maxval=bound)
    bq = jax.random.uniform(kbq, (DIM_OUT,), minval=-bound, maxval=bound)
    bk = jax.random.uniform(kbk, (DIM_OUT,), minval=-bound, maxval=bound)
    bv = jax.random.uniform(kbv, (DIM_OUT,), minval=-bound, maxval=bound)

    out = basic_transformer(x, wq, bq, wk, bk, wv, bv)
    jax.block_until_ready(out)

    ref = _reference(x, wq, bq, wk, bk, wv, bv)
    assert out.shape == (N, DIM_OUT)
    # bf16 MXU operands + approx reciprocal -> relaxed (but still tight) tolerance.
    assert jnp.allclose(out, ref, atol=2e-2, rtol=2e-2), \
        float(jnp.max(jnp.abs(out - ref)))

    print("KERNEL_OK")
</pallas_src>

<mosaic_0001>
module attributes {stable_mosaic.version = 11 : i64} {
  func.func @_basic_transformer_kernel(%arg0: i32, %arg1: memref<8x128xbf16, #tpu.memory_space<vmem>>, %arg2: memref<128x384xbf16, #tpu.memory_space<vmem>>, %arg3: memref<1x384xf32, #tpu.memory_space<vmem>>, %arg4: memref<8x128xf32, #tpu.memory_space<vmem>>) attributes {dimension_semantics = [#tpu.dimension_semantics<parallel>], iteration_bounds = array<i64: 1>, scalar_prefetch = 0 : i64, scratch_operands = 0 : i64, tpu.core_type = #tpu.core_type<tc>, window_params = [{pipeline_mode = #tpu.pipeline_mode<synchronous>, transform_indices = @transform_0, window_bounds = array<i64: 8, 128>}, {pipeline_mode = #tpu.pipeline_mode<synchronous>, transform_indices = @transform_1, window_bounds = array<i64: 128, 384>}, {pipeline_mode = #tpu.pipeline_mode<synchronous>, transform_indices = @transform_2, window_bounds = array<i64: 1, 384>}, {transform_indices = @transform_3, window_bounds = array<i64: 8, 128>}]} {
    %c0 = arith.constant 0 : index
    %c0_0 = arith.constant 0 : index
    %0 = vector.load %arg1[%c0, %c0_0] : memref<8x128xbf16, #tpu.memory_space<vmem>>, vector<8x128xbf16>
    %c0_1 = arith.constant 0 : index
    %c0_2 = arith.constant 0 : index
    %1 = vector.load %arg2[%c0_1, %c0_2] : memref<128x384xbf16, #tpu.memory_space<vmem>>, vector<128x384xbf16>
    %c0_3 = arith.constant 0 : index
    %c0_4 = arith.constant 0 : index
    %2 = vector.load %arg3[%c0_3, %c0_4] : memref<1x384xf32, #tpu.memory_space<vmem>>, vector<1x384xf32>
    %cst = arith.constant dense<0.000000e+00> : vector<8x384xf32>
    %3 = tpu.matmul %0, %1, %cst {dimension_numbers = #tpu.dot_dimension_numbers<[1], [0], [0], [1], [0, 0, 1, 1], [], []>} : vector<8x128xbf16>, vector<128x384xbf16>, vector<8x384xf32> -> vector<8x384xf32>
    %4 = vector.broadcast %2 : vector<1x384xf32> to vector<8x384xf32>
    %5 = arith.addf %3, %4 : vector<8x384xf32>
    %6 = vector.extract_strided_slice %5 {offsets = [0, 0], sizes = [8, 128], strides = [1, 1]} : vector<8x384xf32> to vector<8x128xf32>
    %cst_5 = arith.constant 0.176776692 : f32
    %7 = vector.broadcast %cst_5 : f32 to vector<8x128xf32>
    %8 = arith.mulf %6, %7 : vector<8x128xf32>
    %9 = vector.extract_strided_slice %5 {offsets = [0, 128], sizes = [8, 128], strides = [1, 1]} : vector<8x384xf32> to vector<8x128xf32>
    %10 = vector.extract_strided_slice %5 {offsets = [0, 256], sizes = [8, 128], strides = [1, 1]} : vector<8x384xf32> to vector<8x128xf32>
    %11 = arith.truncf %8 : vector<8x128xf32> to vector<8x128xbf16>
    %12 = arith.truncf %9 : vector<8x128xf32> to vector<8x128xbf16>
    %cst_6 = arith.constant dense<0.000000e+00> : vector<8x8xf32>
    %13 = tpu.matmul %11, %12, %cst_6 {dimension_numbers = #tpu.dot_dimension_numbers<[1], [1], [0], [0], [0, 0, 1, 0], [], []>} : vector<8x128xbf16>, vector<8x128xbf16>, vector<8x8xf32> -> vector<8x8xf32>
    %cst_7 = arith.constant dense<0xFF800000> : vector<8xf32>
    %14 = vector.multi_reduction <maximumf>, %13, %cst_7 [1] : vector<8x8xf32> to vector<8xf32>
    %15 = vector.shape_cast %14 : vector<8xf32> to vector<8x1xf32>
    %16 = vector.broadcast %15 : vector<8x1xf32> to vector<8x8xf32>
    %17 = arith.subf %13, %16 : vector<8x8xf32>
    %18 = math.exp %17 : vector<8x8xf32>
    %cst_8 = arith.constant dense<0.000000e+00> : vector<8xf32>
    %19 = vector.multi_reduction <add>, %18, %cst_8 [1] : vector<8x8xf32> to vector<8xf32>
    %20 = vector.shape_cast %19 : vector<8xf32> to vector<8x1xf32>
    %21 = tpu.reciprocal %20 {approx = true} : vector<8x1xf32> -> vector<8x1xf32>
    %22 = vector.broadcast %21 : vector<8x1xf32> to vector<8x8xf32>
    %23 = arith.mulf %18, %22 : vector<8x8xf32>
    %24 = arith.truncf %23 : vector<8x8xf32> to vector<8x8xbf16>
    %25 = arith.truncf %10 : vector<8x128xf32> to vector<8x128xbf16>
    %cst_9 = arith.constant dense<0.000000e+00> : vector<8x128xf32>
    %26 = tpu.matmul %24, %25, %cst_9 {dimension_numbers = #tpu.dot_dimension_numbers<[1], [0], [0], [1], [0, 0, 1, 1], [], []>} : vector<8x8xbf16>, vector<8x128xbf16>, vector<8x128xf32> -> vector<8x128xf32>
    %cst_10 = arith.constant 0.000000e+00 : f32
    %27 = vector.broadcast %cst_10 : f32 to vector<8x128xf32>
    %28 = arith.maximumf %26, %27 : vector<8x128xf32>
    %c0_11 = arith.constant 0 : index
    %c0_12 = arith.constant 0 : index
    %29 = vector.load %arg4[%c0_11, %c0_12] : memref<8x128xf32, #tpu.memory_space<vmem>>, vector<8x128xf32>
    tpu.vector_store %arg4[%c0_11, %c0_12], %28 {strides = array<i32>} : memref<8x128xf32, #tpu.memory_space<vmem>>, vector<8x128xf32>,
    return
  }
  func.func @transform_0(%arg0: i32) -> (i32, i32) {
    %c0_i32 = arith.constant 0 : i32
    %c0_i32_0 = arith.constant 0 : i32
    %c0_i32_1 = arith.constant 0 : i32
    return %c0_i32, %c0_i32_0 : i32, i32
  }
  func.func @transform_1(%arg0: i32) -> (i32, i32) {
    %c0_i32 = arith.constant 0 : i32
    %c0_i32_0 = arith.constant 0 : i32
    %c0_i32_1 = arith.constant 0 : i32
    return %c0_i32, %c0_i32_0 : i32, i32
  }
  func.func @transform_2(%arg0: i32) -> (i32, i32) {
    %c0_i32 = arith.constant 0 : i32
    %c0_i32_0 = arith.constant 0 : i32
    %c0_i32_1 = arith.constant 0 : i32
    return %c0_i32, %c0_i32_0 : i32, i32
  }
  func.func @transform_3(%arg0: i32) -> (i32, i32) {
    %c0_i32 = arith.constant 0 : i32
    %c0_i32_0 = arith.constant 0 : i32
    return %arg0, %c0_i32 : i32, i32
  }
}

</mosaic_0001>

<bundles_post_ra>
// kernel: tpu_custom_call.1
= control target key start
LH: loop header
LB: loop body
LE: loop exit
PB: predicated region body
PF: predicated region fallthrough
CT: control target
= control target key end

     0   :  { %8 = vsyncpa [#allocation3], 0  ;;  %s689_s0 = inlined_call_operand.hbm [shape: bf16[8,128], index: 0, kind: input, shape index: {}]   ;;  %s690_s1 = inlined_call_operand.hbm [shape: bf16[128,384], index: 1, kind: input, shape index: {}]   ;;  %s691_s2 = inlined_call_operand.vmem [shape: f32[1,384], index: 2, kind: input, shape index: {}]   ;;  %s692_s3 = inlined_call_operand.hbm [shape: f32[8,128], index: 3, kind: output, shape index: {}]  }
   0x1   :  { %9 = vsyncpa [#allocation6], 0 }
   0x2   :  { %10 = vsyncpa [#allocation4], 0  ;;  %s609_s12 = smov [#allocation2]   ;;  %s610_s14 = smov [#allocation5]  }
   0x3   :  { %s17_s13 = sshll.u32 %s609_s12, 4  ;;  %s26_s15 = sshll.u32 %s610_s14, 4  ;;  %s18_s13 = int_to_ptr.vmem [resolvable:$true] %s17_s13  ;;  %s637_s15 = int_to_ptr.vmem [resolvable:$true] %s26_s15 }
   0x4   :  { %s537_s18 = scalar_lea.hbm %s689_s0, 64 }
   0x5   :  { %p538_p0 = scmp.ne.s32.totalorder %s689_s0, %s537_s18  ;;  %p541_p1 = scmp.lt.u32.totalorder %s537_s18, %s689_s0 }
   0x7   :  { %p543_p2 = pnand %p541_p1, %p538_p0 }
   0x9   :  { %546 = shalt.err (!%p543_p2)
}
   0xa   :  { %s547_s23 = scalar_lea.vmem %s18_s13, 64  ;;  %p552_p4 = scmp.lt.s32.totalorder %s18_s13, %s18_s13 }
   0xb   :  { %p548_p3 = scmp.ne.s32.totalorder %s18_s13, %s547_s23  ;;  %p553_p5 = scmp.lt.s32.totalorder %s547_s23, %s547_s23 }
   0xd   :  { %p554_p6 = por %p553_p5, %p552_p4 }
   0xf   :  { %p555_p7 = pnand %p554_p6, %p548_p3 }
  0x11   :  { %558 = shalt.err (!%p555_p7)
}
  0x12   :  { %20 = dma.hbm_to_vmem [thread:$0]  %s689_s0, 64, %s18_s13, [#allocation3]  }
  0x13   :  { %s559_s28 = scalar_lea.hbm %s690_s1, 3072 }
  0x14   :  { %p560_p8 = scmp.ne.s32.totalorder %s690_s1, %s559_s28  ;;  %p563_p9 = scmp.lt.u32.totalorder %s559_s28, %s690_s1 }
  0x16   :  { %p565_p10 = pnand %p563_p9, %p560_p8 }
  0x18   :  { %568 = shalt.err (!%p565_p10)
}
  0x19   :  { %s569_s6 = scalar_lea.vmem %s637_s15, 3072  ;;  %p574_p12 = scmp.lt.s32.totalorder %s637_s15, %s637_s15 }
  0x1a   :  { %p570_p11 = scmp.ne.s32.totalorder %s637_s15, %s569_s6  ;;  %p575_p13 = scmp.lt.s32.totalorder %s569_s6, %s569_s6 }
  0x1c   :  { %p576_p0 = por %p575_p13, %p574_p12 }
  0x1e   :  { %p577_p1 = pnand %p576_p0, %p570_p11 }
  0x20   :  { %580 = shalt.err (!%p577_p1)
}
  0x21   :  { %s611_s0 = smov 192   ;;  %s612_s7 = smov 12  }
  0x22   :  { %32 = dma.hbm_to_vmem [thread:$0]  %s690_s1, 3072, %s637_s15, [#allocation6], %s611_s0, %s611_s0, %s612_s7  }
  0x23   :  { %603 = dma.done.wait [#allocation3], 64  }
  0x24   :  { %604 = vsyncadd [#allocation3], 4294967232 }
  0x25   :  { %605 = dma.done.wait [#allocation6], 3072  }
  0x26   :  { %606 = vsyncadd [#allocation6], 4294964224  ;;  %v613_v0 = vmov 0   ;;  %v501_v1 = vld [vmem:[#allocation5 + $0x4] ss:$12 sps:$4 sm:$0xff]   ;;  %v614_v18 = vmov 0.0   ;;  %v77_v19 = vlaneseq }
  0x27   :  { %252 = vmatprep.mubr.bf16.mxu0 %v613_v0  ;;  %v503_v2 = vld [vmem:[#allocation5] ss:$12 sps:$4 sm:$0xff]   ;;  %220 = vmatprep.subr.bf16.mxu0 %v501_v1  ;;  %v504_v3 = vld [vmem:[#allocation5 + $0x1c] ss:$12 sps:$4 sm:$0xff]   ;;  %v506_v4 = vld [vmem:[#allocation5 + $0x18] ss:$12 sps:$4 sm:$0xff]  }
  0x28   :  { %221 = vmatpush1.bf16.msra.mxu0 %v503_v2  ;;  %v507_v5 = vld [vmem:[#allocation5 + $0x34] ss:$12 sps:$4 sm:$0xff]   ;;  %v509_v6 = vld [vmem:[#allocation5 + $0x30] ss:$12 sps:$4 sm:$0xff]   ;;  %v510_v7 = vld [vmem:[#allocation5 + $0x4c] ss:$12 sps:$4 sm:$0xff]   ;;  %461 = vmatprep.subr.bf16.mxu1 %v614_v18 }
  0x29   :  { %222 = vmatprep.subr.bf16.mxu0 %v504_v3  ;;  %v512_v8 = vld [vmem:[#allocation5 + $0x48] ss:$12 sps:$4 sm:$0xff]   ;;  %v513_v9 = vld [vmem:[#allocation5 + $0x64] ss:$12 sps:$4 sm:$0xff]   ;;  %v515_v10 = vld [vmem:[#allocation5 + $0x60] ss:$12 sps:$4 sm:$0xff]  }
  0x2a   :  { %v516_v11 = vld [vmem:[#allocation5 + $0x7c] ss:$12 sps:$4 sm:$0xff]   ;;  %v518_v12 = vld [vmem:[#allocation5 + $0x78] ss:$12 sps:$4 sm:$0xff]   ;;  %v519_v13 = vld [vmem:[#allocation5 + $0x94] ss:$12 sps:$4 sm:$0xff]  }
  0x2b   :  { %v521_v14 = vld [vmem:[#allocation5 + $0x90] ss:$12 sps:$4 sm:$0xff]   ;;  %v522_v15 = vld [vmem:[#allocation5 + $0xac] ss:$12 sps:$4 sm:$0xff]   ;;  %v524_v16 = vld [vmem:[#allocation5 + $0xa8] ss:$12 sps:$4 sm:$0xff]  }
  0x2c   :  { %223 = vmatpush1.bf16.msra.mxu0 %v506_v4  ;;  %v42_v17 = vld [vmem:[#allocation2] sm:$0xf]  ;;  %vm615_vm0 = vmmov 0   ;;  %v78_v20 = vshrl.u32 %v77_v19, 7  ;;  %v525_v35 = vld [vmem:[#allocation5 + $0x8] ss:$12 sps:$4 sm:$0xff]  }
  0x2d   :  { %224 = vmatprep.subr.bf16.mxu0 %v507_v5  ;;  %477 = vmatprep.mubr.msk.bf16.mxu1 %vm615_vm0, %v614_v18  ;;  %v75_v22 = vld [vmem:[%s691_s2] sm:$0x7]  ;;  %v526_v36 = vld [vmem:[#allocation5 + $0x20] ss:$12 sps:$4 sm:$0xff]   ;;  %v527_v37 = vld [vmem:[#allocation5 + $0x38] ss:$12 sps:$4 sm:$0xff]  }
  0x2e   :  { %v83_v21 = vsub.s32 1, %v78_v20  ;;  %v79_v23 = vsub.s32 0, %v78_v20  ;;  %462 = vmatpush3.bf16.msra.mxu1 %v525_v35  ;;  %v528_v38 = vld [vmem:[#allocation5 + $0x50] ss:$12 sps:$4 sm:$0xff]   ;;  %v529_v39 = vld [vmem:[#allocation5 + $0x68] ss:$12 sps:$4 sm:$0xff]  }
  0x2f   :  { %463 = vmatprep.subr.bf16.mxu1 %v614_v18  ;;  %v530_v40 = vld [vmem:[#allocation5 + $0x80] ss:$12 sps:$4 sm:$0xff]   ;;  %v531_v41 = vld [vmem:[#allocation5 + $0x98] ss:$12 sps:$4 sm:$0xff]   ;;  %v532_v42 = vld [vmem:[#allocation5 + $0xb0] ss:$12 sps:$4 sm:$0xff]  }
  0x30   :  { %225 = vmatpush1.bf16.msra.mxu0 %v509_v6  ;;  %v84_v24 = vrot.slane %v75_v22, %v83_v21  ;;  %v80_v25 = vrot.slane %v75_v22, %v79_v23  ;;  %vm344_vm1 = vcmask 64512   ;;  %v87_v48 = vsub.s32 2, %v78_v20  ;;  %s616_s2 = smov [#allocation7]  }
  0x31   :  { %226 = vmatprep.subr.bf16.mxu0 %v510_v7  ;;  %vm361_vm2 = vcmask 1043456   ;;  %s413_s11 = sshll.u32 %s616_s2, 4  ;;  %s414_s11 = int_to_ptr.vmem [resolvable:$true] %s413_s11 }
  0x32   :  { %464 = vmatpush3.bf16.msra.mxu1 %v526_v36  ;;  %v88_v49 = vrot.slane %v75_v22, %v87_v48  ;;  %s581_s12 = scalar_lea.vmem %s414_s11, 128  ;;  %p586_p3 = scmp.lt.s32.totalorder %s414_s11, %s414_s11 }
  0x33   :  { %465 = vmatprep.subr.bf16.mxu1 %v614_v18  ;;  %p582_p2 = scmp.ne.s32.totalorder %s414_s11, %s581_s12  ;;  %p587_p4 = scmp.lt.s32.totalorder %s581_s12, %s581_s12 }
  0x34   :  { %227 = vmatpush1.bf16.msra.mxu0 %v512_v8 }
  0x35   :  { %228 = vmatprep.subr.bf16.mxu0 %v513_v9  ;;  %p588_p5 = por %p587_p4, %p586_p3 }
  0x36   :  { %466 = vmatpush3.bf16.msra.mxu1 %v527_v37 }
  0x37   :  { %467 = vmatprep.subr.bf16.mxu1 %v614_v18  ;;  %p589_p6 = pnand %p588_p5, %p582_p2 }
  0x38   :  { %229 = vmatpush1.bf16.msra.mxu0 %v515_v10 }
  0x39   :  { %230 = vmatprep.subr.bf16.mxu0 %v516_v11 }
  0x3a   :  { %468 = vmatpush3.bf16.msra.mxu1 %v528_v38 }
  0x3b   :  { %469 = vmatprep.subr.bf16.mxu1 %v614_v18 }
  0x3c   :  { %231 = vmatpush1.bf16.msra.mxu0 %v518_v12 }
  0x3d   :  { %232 = vmatprep.subr.bf16.mxu0 %v519_v13 }
  0x3e   :  { %470 = vmatpush3.bf16.msra.mxu1 %v529_v39 }
  0x3f   :  { %471 = vmatprep.subr.bf16.mxu1 %v614_v18 }
  0x40   :  { %233 = vmatpush1.bf16.msra.mxu0 %v521_v14 }
  0x41   :  { %234 = vmatprep.subr.bf16.mxu0 %v522_v15 }
  0x42   :  { %472 = vmatpush3.bf16.msra.mxu1 %v530_v40 }
  0x43   :  { %473 = vmatprep.subr.bf16.mxu1 %v614_v18 }
  0x44   :  { %235 = vmatpush1.bf16.msra.mxu0 %v524_v16 }
  0x45   :  { %481 = vmatprep.subr.bf16.mxu0 %v614_v18 }
  0x46   :  { %474 = vmatpush3.bf16.msra.mxu1 %v531_v41 }
  0x47   :  { %253 = vmatmul.mubr.bf16.vlgmr.msra.gmra.mrb[0].mxu0 %v42_v17  ;;  %475 = vmatprep.subr.bf16.mxu1 %v614_v18 }
  0x48   :  { %483 = vmatprep.mubr.msk.bf16.mxu0 %vm615_vm0, %v614_v18 }
  0x4a   :  { %476 = vmatpush3.bf16.msra.mxu1 %v532_v42 }
  0x4b   :  { %487 = vmatprep.subr.bf16.mxu1 %v614_v18 }
  0x4d   :  { %478 = vmatmul.mubr.bf16.vlgmr.msra.gmra.mrb[0].mxu1 %v42_v17 }
  0x4e   :  { %489 = vmatprep.mubr.msk.bf16.mxu1 %vm615_vm0, %v614_v18 }
 0x11a   :  { %v254_v26 = vpop.f32.mrb[0].mxu0 }
 0x11b   :  { %v256_v27 = vpop.f32.mrb[1].mxu0  ;;  %v255_v30 = vadd.f32 %v254_v26, %v80_v25 }
 0x11c   :  { %v257_v28 = vadd.f32 %v256_v27, %v84_v24  ;;  %v258_v29 = vpop.f32.mrb[2].mxu0 }
 0x11d   :  { %v259_v31 = vpop.f32.mrb[3].mxu0  ;;  %v301_v33 = vmul.f32 0.17677669, %v255_v30 }
 0x11e   :  { %v303_v32 = vpack.c.bf16 %v257_v28, %v257_v28 }
 0x11f   :  { %v302_v34 = vpack.c.bf16 %v301_v33, %v301_v33 }
 0x120   :  { %482 = vmatpush3.bf16.xpose.msra.mxu0 %v303_v32  ;;  %v295_v50 = vpop.f32.mrb[0].mxu1 }
 0x121   :  { %v296_v51 = vadd.f32 %v295_v50, %v88_v49  ;;  %v479_v52 = vpop.f32.mrb[1].mxu1 }
 0x122   :  { %v298_v53 = vpop.f32.mrb[2].mxu1 }
 0x123   :  { %v357_v54 = vpack.c.bf16 %v296_v51, %v296_v51  ;;  %v480_v55 = vpop.f32.mrb[3].mxu1 }
 0x125   :  { %v363_v56 = vsel %vm361_vm2, %v357_v54, 0 }
 0x126   :  { %488 = vmatpush3.bf16.msra.mxu1 %v363_v56 }
 0x127   :  { %484 = vmatmul.mubr.bf16.vlgmr.msra.gmra.mrb[4].mxu0 %v302_v34 }
 0x1fa   :  { %v338_v43 = vpop.f32.mrb[4].mxu0 }
 0x1fb   :  { %v485_v44 = vpop.f32.mrb[5].mxu0  ;;  %v345_v45 = vsel %vm344_vm1, %v338_v43, -inf }
 0x1fc   :  { %346 = vmax.xlane.f32.xlu0 %v345_v45  ;;  %v341_v46 = vpop.f32.mrb[6].mxu0 }
 0x1fd   :  { %v486_v47 = vpop.f32.mrb[7].mxu0 }
 0x289   :  { %v347_v57 = vpop.xlane.xlu0 %346 }
 0x28a   :  { %v348_v58 = vsub.f32 %v338_v43, %v347_v57 }
 0x28c   :  { %v349_v59 = vmul.f32 1.442695, %v348_v58 }
 0x28e   :  { %533 = vpow2.f32 %v349_v59 }
 0x298   :  { %v534_v60 = vpop.eup %533 }
 0x299   :  { %v351_v61 = vsel %vm344_vm1, %v534_v60, 0.0 }
 0x29a   :  { %352 = vadd.xlane.f32.xlu0 %v351_v61 }
 0x327   :  { %v353_v62 = vpop.xlane.xlu0 %352 }
 0x328   :  { %535 = vrcp.f32 %v353_v62 }
 0x332   :  { %v536_v63 = vpop.eup %535 }
 0x333   :  { %v355_v0 = vmul.f32 %v536_v63, %v534_v60 }
 0x335   :  { %v356_v1 = vpack.c.bf16 %v355_v0, %v355_v0 }
 0x337   :  { %490 = vmatmul.mubr.msk.bf16.vlgmr.msra.gmra.mrb[4].mxu1 %vm344_vm1, %v356_v1 }
 0x40a   :  { %v399_v2 = vpop.f32.mrb[4].mxu1 }
 0x40b   :  { %v405_v3 = vmax.f32 %v399_v2, 0.0  ;;  %v491_v4 = vpop.f32.mrb[5].mxu1 }
 0x40c   :  { %v402_v5 = vpop.f32.mrb[6].mxu1 }
 0x40d   :  { %406 = vst [vmem:[#allocation7] sm:$0xff] %v405_v3  ;;  %v492_v6 = vpop.f32.mrb[7].mxu1 }
 0x40e   :  { %592 = shalt.err (!%p589_p6)
}
 0x40f   :  { %s593_s15 = scalar_lea.hbm %s692_s3, 128 }
 0x410   :  { %p594_p7 = scmp.ne.s32.totalorder %s692_s3, %s593_s15  ;;  %p597_p8 = scmp.lt.u32.totalorder %s593_s15, %s692_s3 }
 0x412   :  { %p599_p9 = pnand %p597_p8, %p594_p7 }
 0x414   :  { %602 = shalt.err (!%p599_p9)
}
 0x415   :  { %416 = dma.vmem_to_hbm [thread:$0]  %s414_s11, 128, %s692_s3, [#allocation4]  }
 0x416   :  { %607 = dma.done.wait [#allocation4], 128  }
 0x417   :  { %608 = vsyncadd [#allocation4], 4294967168 }
 0x418   :  { %420 = vsyncpa [#allocation3], 1 }
 0x419   :  { %421 = vsyncpa [#allocation6], 1 }
 0x41a   :  { %422 = vsyncpa [#allocation4], 1 }

</bundles_post_ra>
